<compile_context>
chip_gen: v6e
topology: v6e:2x2x1
jax: 0.10.0
libtpu: 0.0.40
codegen_flags: <defaults>
</compile_context>

<pallas_src>
import functools

import jax
import jax.numpy as jnp
from jax.experimental import pallas as pl
from jax.experimental.pallas import tpu as pltpu

F_PAD = 128      # lane width: feature dims zero-padded to this
NODE_PAD = 128   # node-set sizes padded to this (keeps tiles (8,128)-legal
                 # and makes layer-to-layer chaining trivially aligned)


def _round_up(n, m):
    return (n + m - 1) // m * m


def _compiler_params(**kw):
    # robust across jax versions (older releases named it TPUCompilerParams)
    cls = getattr(pltpu, "CompilerParams", None) or getattr(pltpu, "TPUCompilerParams")
    return cls(**kw)


def _vmem_limit_bytes():
    # v5e/v6e: 128 MiB physical VMEM -> allow up to 96 MiB scoped;
    # v7x: 64 MiB per TensorCore -> this caps at 48 MiB automatically.
    cap = 128 * 1024 * 1024
    try:
        cap = int(getattr(pltpu.get_tpu_info(), "vmem_capacity_bytes", cap))
    except Exception:
        pass
    return min(96 * 1024 * 1024, (cap * 3) // 4)


def _choose_tile(n_pad, target, unit):
    """Largest divisor of n_pad that is <= target and a multiple of `unit`;
    falls back to the full extent (always legal, just uses more VMEM)."""
    if n_pad <= target:
        return n_pad
    t = (target // unit) * unit
    while t >= unit:
        if n_pad % t == 0:
            return t
        t -= unit
    return n_pad


# ---------------------------------------------------------------------------
# kernel: one SAGEConv('mean') layer
#   grid = (dst tiles [parallel], src reduction tiles [arbitrary])
#   sum_j A[i,j] * h_src[j] accumulated in an f32 VMEM scratch; the epilogue
#   at the last k step applies 1/deg (f32), the two projections, bias, ReLU
#   and Dropout(0.5), then stores the lane-dense output tile.
# ---------------------------------------------------------------------------
def _sage_conv_kernel(a_ref, hsrc_ref, hdst_ref, deginv_ref, ws_ref, wn_ref,
                      b_ref, m_ref, o_ref, acc_ref, *,
                      apply_act, src_resident, tk):
    k = pl.program_id(1)

    @pl.when(k == 0)
    def _init():
        acc_ref[...] = jnp.zeros_like(acc_ref)

    # int8 0/1 edge mask -> bf16 in VMEM (HBM only ever sees 1 byte/edge)
    a_tile = a_ref[...].astype(jnp.bfloat16)
    if src_resident:
        # h_src lives fully in VMEM (DMA'd once); slice the k-th chunk here
        start = pl.multiple_of(k * tk, tk)
        h_tile = hsrc_ref[pl.ds(start, tk), :]
    else:
        h_tile = hsrc_ref[...]
    acc_ref[...] += jnp.dot(a_tile, h_tile, preferred_element_type=jnp.float32)

    @pl.when(k == pl.num_programs(1) - 1)
    def _finalize():
        # exact f32 mean normalization (1/deg is NOT baked into the mask)
        h_neigh = (acc_ref[...] * deginv_ref[...]).astype(jnp.bfloat16)
        out = (jnp.dot(hdst_ref[...], ws_ref[...],
                       preferred_element_type=jnp.float32)
               + jnp.dot(h_neigh, wn_ref[...],
                         preferred_element_type=jnp.float32)
               + b_ref[...])
        if apply_act:
            out = jnp.maximum(out, 0.0)                        # ReLU
            out = jnp.where(m_ref[...] != 0, out * 2.0, 0.0)   # Dropout(p=0.5)
        o_ref[...] = out.astype(o_ref.dtype)


def sage_conv(mask, deg_inv, h, w_self, w_neigh, bias, drop_mask, *,
              apply_act, out_dtype, tile_dst=512, tile_src=1024,
              src_resident_bytes=None):
    """One SAGEConv('mean') layer as a tiled Pallas kernel.

    mask     : (n_dst_pad, n_src_pad) int8 0/1 edge mask
    deg_inv  : (n_dst_pad, 1) f32 per-dst 1/in-degree (0 for padded rows)
    h        : (n_src_pad, F_PAD) bf16 node features (dst nodes are a prefix)
    w_self   : (F_PAD, F_PAD) bf16     w_neigh : (F_PAD, F_PAD) bf16
    bias     : (1, F_PAD) f32
    drop_mask: (n_dst_pad, F_PAD) int8 keep-mask, or (1, F_PAD) dummy when
               apply_act=False
    """
    n_dst_pad, n_src_pad = mask.shape
    f_pad = w_self.shape[1]
    assert h.shape == (n_src_pad, f_pad)

    tm = _choose_tile(n_dst_pad, tile_dst, 8)
    # keep >= 2 dst tiles when possible so the "parallel" axis feeds both
    # TensorCores on v7x (megacore sharding)
    if n_dst_pad // tm < 2 and tm % 16 == 0:
        tm //= 2
    tk = _choose_tile(n_src_pad, tile_src, 128)

    if src_resident_bytes is None:
        src_resident_bytes = min(16 * 1024 * 1024, _vmem_limit_bytes() // 8)
    src_resident = h.size * h.dtype.itemsize <= src_resident_bytes

    hsrc_spec = (pl.BlockSpec((n_src_pad, f_pad), lambda i, k: (0, 0))
                 if src_resident
                 else pl.BlockSpec((tk, f_pad), lambda i, k: (k, 0)))
    m_spec = (pl.BlockSpec((tm, f_pad), lambda i, k: (i, 0))
              if apply_act
              else pl.BlockSpec((1, f_pad), lambda i, k: (0, 0)))

    kernel = functools.partial(_sage_conv_kernel, apply_act=apply_act,
                               src_resident=src_resident, tk=tk)
    return pl.pallas_call(
        kernel,
        out_shape=jax.ShapeDtypeStruct((n_dst_pad, f_pad), out_dtype),
        grid_spec=pltpu.PrefetchScalarGridSpec(
            num_scalar_prefetch=0,
            grid=(n_dst_pad // tm, n_src_pad // tk),
            in_specs=[
                pl.BlockSpec((tm, tk), lambda i, k: (i, k)),        # edge mask
                hsrc_spec,                                          # h_src
                pl.BlockSpec((tm, f_pad), lambda i, k: (i, 0)),     # h_dst (same array)
                pl.BlockSpec((tm, 1), lambda i, k: (i, 0)),         # 1/deg
                pl.BlockSpec((f_pad, f_pad), lambda i, k: (0, 0)),  # W_self
                pl.BlockSpec((f_pad, f_pad), lambda i, k: (0, 0)),  # W_neigh
                pl.BlockSpec((1, f_pad), lambda i, k: (0, 0)),      # bias
                m_spec,                                             # dropout keep-mask
            ],
            out_specs=pl.BlockSpec((tm, f_pad), lambda i, k: (i, 0)),
            scratch_shapes=[pltpu.VMEM((tm, f_pad), jnp.float32)],
        ),
        compiler_params=_compiler_params(
            dimension_semantics=("parallel", "arbitrary"),
            vmem_limit_bytes=_vmem_limit_bytes()),
    )(mask, h, h, deg_inv, w_self, w_neigh, bias, drop_mask)


def sage_forward(blocks_p, h0, params_p, drop_masks, *,
                 tile_dst=512, tile_src=1024, src_resident_bytes=None):
    """Layer-wise forward; hidden layers flow bf16 kernel->kernel, final f32."""
    h = h0
    n_layers = len(params_p)
    dummy_mask = jnp.ones((1, F_PAD), jnp.int8)
    for l, ((mask, deg_inv), (ws, wn, b)) in enumerate(zip(blocks_p, params_p)):
        apply_act = l != n_layers - 1
        h = sage_conv(mask, deg_inv, h, ws, wn, b,
                      drop_masks[l] if apply_act else dummy_mask,
                      apply_act=apply_act,
                      out_dtype=jnp.bfloat16 if apply_act else jnp.float32,
                      tile_dst=tile_dst, tile_src=tile_src,
                      src_resident_bytes=src_resident_bytes)
    return h


# ---------------------------------------------------------------------------
# one-time preparation (outside the per-forward hot path): no per-call casts
# ---------------------------------------------------------------------------
def prepare_inputs(adj_masks, x, f_pad=F_PAD):
    """int8 edge mask + f32 1/deg per block, bf16 lane-padded features."""
    n_src_pad = _round_up(adj_masks[0].shape[1], NODE_PAD)
    n, f = x.shape
    h0 = jnp.zeros((n_src_pad, f_pad), jnp.bfloat16).at[:n, :f].set(
        x.astype(jnp.bfloat16))

    blocks_p = []
    src_pad = n_src_pad
    for a in adj_masks:
        n_dst, n_src = a.shape
        dst_pad = _round_up(n_dst, NODE_PAD)
        edge = a > 0
        m = jnp.zeros((dst_pad, src_pad), jnp.int8).at[:n_dst, :n_src].set(
            edge.astype(jnp.int8))
        deg = jnp.sum(edge.astype(jnp.float32), axis=1)
        dinv = jnp.where(deg > 0, 1.0 / deg, 0.0)
        deg_inv = jnp.zeros((dst_pad, 1), jnp.float32).at[:n_dst, 0].set(dinv)
        blocks_p.append((m, deg_inv))
        src_pad = dst_pad
    return blocks_p, h0


def init_sage_params(key, in_feats, n_hidden, n_classes):
    dims = [(in_feats, n_hidden), (n_hidden, n_hidden), (n_hidden, n_classes)]
    params = []
    for fi, fo in dims:
        key, k1, k2 = jax.random.split(key, 3)
        limit = (6.0 / (fi + fo)) ** 0.5                  # xavier-uniform
        w_self = jax.random.uniform(k1, (fi, fo), jnp.float32, -limit, limit)
        w_neigh = jax.random.uniform(k2, (fi, fo), jnp.float32, -limit, limit)
        bias = jnp.zeros((fo,), jnp.float32)
        params.append((w_self, w_neigh, bias))
    return params


def prepare_params(params, f_pad=F_PAD):
    out = []
    for w_self, w_neigh, bias in params:
        fi, fo = w_self.shape
        ws = jnp.zeros((f_pad, f_pad), jnp.float32).at[:fi, :fo].set(w_self)
        wn = jnp.zeros((f_pad, f_pad), jnp.float32).at[:fi, :fo].set(w_neigh)
        b = jnp.zeros((1, f_pad), jnp.float32).at[0, :fo].set(bias)
        out.append((ws.astype(jnp.bfloat16), wn.astype(jnp.bfloat16), b))
    return out


def make_dropout_masks(key, blocks_p, n_act_layers, f_pad=F_PAD):
    """1-byte Bernoulli(0.5) keep masks per activated layer (fresh per call).
    TODO(synk): torch.nn.Dropout's RNG stream is not reproducible; on real HW
    these could also be generated on-chip with pltpu.prng_random_bits."""
    masks = []
    for l in range(n_act_layers):
        key, k = jax.random.split(key)
        n_dst_pad = blocks_p[l][0].shape[0]
        masks.append(jax.random.bernoulli(k, 0.5, (n_dst_pad, f_pad))
                     .astype(jnp.int8))
    return masks


def make_block_adj(key, n_dst, n_src):
    mask = (jax.random.uniform(key, (n_dst, n_src)) < 0.3).astype(jnp.float32)
    return mask.at[:, 0].set(1.0)          # every dst has >= 1 in-neighbor


# ---------------------------------------------------------------------------
# pure-JAX reference (mirrors the kernel's bf16 operand / f32 accum choices)
# ---------------------------------------------------------------------------
def sage_reference(adj_masks, x, params, drop_masks):
    n_layers = len(params)
    h = x.astype(jnp.float32)
    for l, (a, (w_self, w_neigh, bias)) in enumerate(zip(adj_masks, params)):
        n_dst = a.shape[0]
        fo = w_self.shape[1]
        edge = (a > 0).astype(jnp.float32)
        deg = jnp.sum(edge, axis=1, keepdims=True)
        deg_inv = jnp.where(deg > 0, 1.0 / deg, 0.0)
        h_b = h.astype(jnp.bfloat16)
        acc = jnp.dot(edge.astype(jnp.bfloat16), h_b,
                      preferred_element_type=jnp.float32)
        h_neigh = (acc * deg_inv).astype(jnp.bfloat16)
        out = (jnp.dot(h_b[:n_dst], w_self.astype(jnp.bfloat16),
                       preferred_element_type=jnp.float32)
               + jnp.dot(h_neigh, w_neigh.astype(jnp.bfloat16),
                         preferred_element_type=jnp.float32)
               + bias[None, :])
        if l != n_layers - 1:
            out = jnp.maximum(out, 0.0)
            keep = drop_masks[l][:n_dst, :fo] != 0
            out = jnp.where(keep, out * 2.0, 0.0)
            out = out.astype(jnp.bfloat16).astype(jnp.float32)  # hidden kept bf16
        h = out
    return h


if __name__ == "__main__":
    in_feats, n_hidden, n_classes = 32, 32, 8
    key = jax.random.PRNGKey(0)

    def check(sizes, tile_dst, tile_src, src_resident_bytes, key):
        n_src0, n_dst0, n_dst1, n_dst2 = sizes
        key, kx, kb0, kb1, kb2, kp, kd = jax.random.split(key, 7)
        x = jax.random.normal(kx, (n_src0, in_feats), jnp.float32)
        adj = [make_block_adj(kb0, n_dst0, n_src0),
               make_block_adj(kb1, n_dst1, n_dst0),
               make_block_adj(kb2, n_dst2, n_dst1)]
        params = init_sage_params(kp, in_feats, n_hidden, n_classes)

        # one-time preparation (not in the per-forward hot path)
        blocks_p, h0 = prepare_inputs(adj, x)
        params_p = prepare_params(params)
        drop_masks = make_dropout_masks(kd, blocks_p, n_act_layers=2)

        out_pad = sage_forward(blocks_p, h0, params_p, drop_masks,
                               tile_dst=tile_dst, tile_src=tile_src,
                               src_resident_bytes=src_resident_bytes)
        jax.block_until_ready(out_pad)
        out = out_pad[:n_dst2, :n_classes]

        ref = sage_reference(adj, x, params, drop_masks)
        assert out.shape == ref.shape == (n_dst2, n_classes)
        assert bool(jnp.all(jnp.isfinite(out)))
        assert bool(jnp.allclose(out, ref, atol=5e-2, rtol=5e-2)), \
            float(jnp.max(jnp.abs(out - ref)))
        return key

    # demo / minibatch scale (matches the original module sizes)
    key = check((64, 32, 16, 8), 512, 1024, None, key)
    # larger, multi-tile grids with the VMEM-resident h_src path (in-kernel
    # k-slicing) exercised
    key = check((512, 384, 256, 128), 128, 256, 16 * 1024 * 1024, key)
    # same shapes with the streamed (non-resident) h_src path
    key = check((512, 384, 256, 128), 128, 256, 0, key)

    print("KERNEL_OK")
</pallas_src>

<mosaic_0001>
module attributes {stable_mosaic.version = 11 : i64} {
  func.func @_sage_conv_kernel(%arg0: i32, %arg1: i32, %arg2: memref<64x128xi8, #tpu.memory_space<vmem>>, %arg3: memref<128x128xbf16, #tpu.memory_space<vmem>>, %arg4: memref<64x128xbf16, #tpu.memory_space<vmem>>, %arg5: memref<64x1xf32, #tpu.memory_space<vmem>>, %arg6: memref<128x128xbf16, #tpu.memory_space<vmem>>, %arg7: memref<128x128xbf16, #tpu.memory_space<vmem>>, %arg8: memref<1x128xf32, #tpu.memory_space<vmem>>, %arg9: memref<64x128xi8, #tpu.memory_space<vmem>>, %arg10: memref<64x128xbf16, #tpu.memory_space<vmem>>, %arg11: memref<64x128xf32, #tpu.memory_space<vmem>>) attributes {dimension_semantics = [#tpu.dimension_semantics<parallel>, #tpu.dimension_semantics<arbitrary>], iteration_bounds = array<i64: 2, 1>, scalar_prefetch = 0 : i64, scratch_operands = 1 : i64, tpu.core_type = #tpu.core_type<tc>, window_params = [{transform_indices = @transform_0, window_bounds = array<i64: 64, 128>}, {pipeline_mode = #tpu.pipeline_mode<synchronous>, transform_indices = @transform_1, window_bounds = array<i64: 128, 128>}, {transform_indices = @transform_2, window_bounds = array<i64: 64, 128>}, {transform_indices = @transform_3, window_bounds = array<i64: 64, 1>}, {pipeline_mode = #tpu.pipeline_mode<synchronous>, transform_indices = @transform_4, window_bounds = array<i64: 128, 128>}, {pipeline_mode = #tpu.pipeline_mode<synchronous>, transform_indices = @transform_5, window_bounds = array<i64: 128, 128>}, {pipeline_mode = #tpu.pipeline_mode<synchronous>, transform_indices = @transform_6, window_bounds = array<i64: 1, 128>}, {transform_indices = @transform_7, window_bounds = array<i64: 64, 128>}, {transform_indices = @transform_8, window_bounds = array<i64: 64, 128>}]} {
    %c0_i32 = arith.constant 0 : i32
    %0 = arith.cmpi eq, %arg1, %c0_i32 : i32
    %1 = arith.extui %0 : i1 to i32
    %c0_i32_0 = arith.constant 0 : i32
    %2 = arith.cmpi ne, %1, %c0_i32_0 : i32
    scf.if %2 {
      %cst_9 = arith.constant 0.000000e+00 : f32
      %16 = vector.broadcast %cst_9 : f32 to vector<64x128xf32>
      %c0_10 = arith.constant 0 : index
      %c0_11 = arith.constant 0 : index
      %17 = vector.load %arg11[%c0_10, %c0_11] : memref<64x128xf32, #tpu.memory_space<vmem>>, vector<64x128xf32>
      tpu.vector_store %arg11[%c0_10, %c0_11], %16 {strides = array<i32>} : memref<64x128xf32, #tpu.memory_space<vmem>>, vector<64x128xf32>,
    } else {
    }
    %c0 = arith.constant 0 : index
    %c0_1 = arith.constant 0 : index
    %3 = vector.load %arg2[%c0, %c0_1] : memref<64x128xi8, #tpu.memory_space<vmem>>, vector<64x128xi8>
    %4 = arith.sitofp %3 : vector<64x128xi8> to vector<64x128xbf16>
    %c128_i32 = arith.constant 128 : i32
    %5 = arith.muli %arg1, %c128_i32 : i32
    %6 = tpu.assume_multiple %5, 128 : i32
    %7 = arith.index_cast %6 : i32 to index
    %c0_2 = arith.constant 0 : index
    %8 = vector.load %arg3[%7, %c0_2] : memref<128x128xbf16, #tpu.memory_space<vmem>>, vector<128x128xbf16>
    %c0_3 = arith.constant 0 : index
    %c0_4 = arith.constant 0 : index
    %9 = vector.load %arg11[%c0_3, %c0_4] : memref<64x128xf32, #tpu.memory_space<vmem>>, vector<64x128xf32>
    %cst = arith.constant dense<0.000000e+00> : vector<64x128xf32>
    %10 = tpu.matmul %4, %8, %cst {dimension_numbers = #tpu.dot_dimension_numbers<[1], [0], [0], [1], [0, 0, 1, 1], [], []>} : vector<64x128xbf16>, vector<128x128xbf16>, vector<64x128xf32> -> vector<64x128xf32>
    %11 = arith.addf %9, %10 : vector<64x128xf32>
    %c0_5 = arith.constant 0 : index
    %c0_6 = arith.constant 0 : index
    %12 = vector.load %arg11[%c0_5, %c0_6] : memref<64x128xf32, #tpu.memory_space<vmem>>, vector<64x128xf32>
    tpu.vector_store %arg11[%c0_5, %c0_6], %11 {strides = array<i32>} : memref<64x128xf32, #tpu.memory_space<vmem>>, vector<64x128xf32>,
    %c0_i32_7 = arith.constant 0 : i32
    %13 = arith.cmpi eq, %arg1, %c0_i32_7 : i32
    %14 = arith.extui %13 : i1 to i32
    %c0_i32_8 = arith.constant 0 : i32
    %15 = arith.cmpi ne, %14, %c0_i32_8 : i32
    scf.if %15 {
      %c0_9 = arith.constant 0 : index
      %c0_10 = arith.constant 0 : index
      %16 = vector.load %arg11[%c0_9, %c0_10] : memref<64x128xf32, #tpu.memory_space<vmem>>, vector<64x128xf32>
      %c0_11 = arith.constant 0 : index
      %c0_12 = arith.constant 0 : index
      %17 = vector.load %arg5[%c0_11, %c0_12] : memref<64x1xf32, #tpu.memory_space<vmem>>, vector<64x1xf32>
      %18 = vector.broadcast %17 : vector<64x1xf32> to vector<64x128xf32>
      %19 = arith.mulf %16, %18 : vector<64x128xf32>
      %20 = arith.truncf %19 : vector<64x128xf32> to vector<64x128xbf16>
      %c0_13 = arith.constant 0 : index
      %c0_14 = arith.constant 0 : index
      %21 = vector.load %arg4[%c0_13, %c0_14] : memref<64x128xbf16, #tpu.memory_space<vmem>>, vector<64x128xbf16>
      %c0_15 = arith.constant 0 : index
      %c0_16 = arith.constant 0 : index
      %22 = vector.load %arg6[%c0_15, %c0_16] : memref<128x128xbf16, #tpu.memory_space<vmem>>, vector<128x128xbf16>
      %cst_17 = arith.constant dense<0.000000e+00> : vector<64x128xf32>
      %23 = tpu.matmul %21, %22, %cst_17 {dimension_numbers = #tpu.dot_dimension_numbers<[1], [0], [0], [1], [0, 0, 1, 1], [], []>} : vector<64x128xbf16>, vector<128x128xbf16>, vector<64x128xf32> -> vector<64x128xf32>
      %c0_18 = arith.constant 0 : index
      %c0_19 = arith.constant 0 : index
      %24 = vector.load %arg7[%c0_18, %c0_19] : memref<128x128xbf16, #tpu.memory_space<vmem>>, vector<128x128xbf16>
      %cst_20 = arith.constant dense<0.000000e+00> : vector<64x128xf32>
      %25 = tpu.matmul %20, %24, %cst_20 {dimension_numbers = #tpu.dot_dimension_numbers<[1], [0], [0], [1], [0, 0, 1, 1], [], []>} : vector<64x128xbf16>, vector<128x128xbf16>, vector<64x128xf32> -> vector<64x128xf32>
      %26 = arith.addf %23, %25 : vector<64x128xf32>
      %c0_21 = arith.constant 0 : index
      %c0_22 = arith.constant 0 : index
      %27 = vector.load %arg8[%c0_21, %c0_22] : memref<1x128xf32, #tpu.memory_space<vmem>>, vector<1x128xf32>
      %28 = vector.broadcast %27 : vector<1x128xf32> to vector<64x128xf32>
      %29 = arith.addf %26, %28 : vector<64x128xf32>
      %cst_23 = arith.constant 0.000000e+00 : f32
      %30 = vector.broadcast %cst_23 : f32 to vector<64x128xf32>
      %31 = arith.maximumf %29, %30 : vector<64x128xf32>
      %c0_24 = arith.constant 0 : index
      %c0_25 = arith.constant 0 : index
      %32 = vector.load %arg9[%c0_24, %c0_25] : memref<64x128xi8, #tpu.memory_space<vmem>>, vector<64x128xi8>
      %c0_i8 = arith.constant 0 : i8
      %33 = vector.broadcast %c0_i8 : i8 to vector<64x128xi8>
      %34 = arith.cmpi ne, %32, %33 : vector<64x128xi8>
      %cst_26 = arith.constant 2.000000e+00 : f32
      %35 = vector.broadcast %cst_26 : f32 to vector<64x128xf32>
      %36 = arith.mulf %31, %35 : vector<64x128xf32>
      %cst_27 = arith.constant 0.000000e+00 : f32
      %37 = vector.broadcast %cst_27 : f32 to vector<64x128xf32>
      %38 = arith.select %34, %36, %37 : vector<64x128xi1>, vector<64x128xf32>
      %39 = arith.truncf %38 : vector<64x128xf32> to vector<64x128xbf16>
      %c0_28 = arith.constant 0 : index
      %c0_29 = arith.constant 0 : index
      %40 = vector.load %arg10[%c0_28, %c0_29] : memref<64x128xbf16, #tpu.memory_space<vmem>>, vector<64x128xbf16>
      tpu.vector_store %arg10[%c0_28, %c0_29], %39 {strides = array<i32>} : memref<64x128xbf16, #tpu.memory_space<vmem>>, vector<64x128xbf16>,
    } else {
    }
    return
  }
  func.func @transform_0(%arg0: i32, %arg1: i32) -> (i32, i32) {
    %c0_i32 = arith.constant 0 : i32
    return %arg0, %arg1 : i32, i32
  }
  func.func @transform_1(%arg0: i32, %arg1: i32) -> (i32, i32) {
    %c0_i32 = arith.constant 0 : i32
    %c0_i32_0 = arith.constant 0 : i32
    %c0_i32_1 = arith.constant 0 : i32
    return %c0_i32, %c0_i32_0 : i32, i32
  }
  func.func @transform_2(%arg0: i32, %arg1: i32) -> (i32, i32) {
    %c0_i32 = arith.constant 0 : i32
    %c0_i32_0 = arith.constant 0 : i32
    return %arg0, %c0_i32 : i32, i32
  }
  func.func @transform_3(%arg0: i32, %arg1: i32) -> (i32, i32) {
    %c0_i32 = arith.constant 0 : i32
    %c0_i32_0 = arith.constant 0 : i32
    return %arg0, %c0_i32 : i32, i32
  }
  func.func @transform_4(%arg0: i32, %arg1: i32) -> (i32, i32) {
    %c0_i32 = arith.constant 0 : i32
    %c0_i32_0 = arith.constant 0 : i32
    %c0_i32_1 = arith.constant 0 : i32
    return %c0_i32, %c0_i32_0 : i32, i32
  }
  func.func @transform_5(%arg0: i32, %arg1: i32) -> (i32, i32) {
    %c0_i32 = arith.constant 0 : i32
    %c0_i32_0 = arith.constant 0 : i32
    %c0_i32_1 = arith.constant 0 : i32
    return %c0_i32, %c0_i32_0 : i32, i32
  }
  func.func @transform_6(%arg0: i32, %arg1: i32) -> (i32, i32) {
    %c0_i32 = arith.constant 0 : i32
    %c0_i32_0 = arith.constant 0 : i32
    %c0_i32_1 = arith.constant 0 : i32
    return %c0_i32, %c0_i32_0 : i32, i32
  }
  func.func @transform_7(%arg0: i32, %arg1: i32) -> (i32, i32) {
    %c0_i32 = arith.constant 0 : i32
    %c0_i32_0 = arith.constant 0 : i32
    return %arg0, %c0_i32 : i32, i32
  }
  func.func @transform_8(%arg0: i32, %arg1: i32) -> (i32, i32) {
    %c0_i32 = arith.constant 0 : i32
    %c0_i32_0 = arith.constant 0 : i32
    return %arg0, %c0_i32 : i32, i32
  }
}

</mosaic_0001>

<bundles_post_ra>
// kernel: tpu_custom_call.1
= control target key start
LH: loop header
LB: loop body
LE: loop exit
PB: predicated region body
PF: predicated region fallthrough
CT: control target
= control target key end

     0   :  { %s2254_s0 = inlined_call_operand.hbm [shape: s8[128,128], index: 0, kind: input, shape index: {}]   ;;  %s2255_s1 = inlined_call_operand.vmem [shape: bf16[128,128], index: 1, kind: input, shape index: {}]   ;;  %s2256_s2 = inlined_call_operand.vmem [shape: bf16[128,128], index: 2, kind: input, shape index: {}]   ;;  %s2257_s3 = inlined_call_operand.vmem [shape: f32[128,1], index: 3, kind: input, shape index: {}]   ;;  %s2258_s4 = inlined_call_operand.hbm [shape: bf16[128,128], index: 4, kind: input, shape index: {}]   ;;  %s2259_s5 = inlined_call_operand.hbm [shape: bf16[128,128], index: 5, kind: input, shape index: {}]   ;;  %s2260_s6 = inlined_call_operand.vmem [shape: f32[1,128], index: 6, kind: input, shape index: {}]   ;;  %s2261_s7 = inlined_call_operand.hbm [shape: s8[128,128], index: 7, kind: input, shape index: {}]   ;;  %s2262_s8 = inlined_call_operand.hbm [shape: bf16[128,128], index: 8, kind: output, shape index: {}]  }
   0x1   :  { %2274 = sst [smem:[#allocation22_spill]] %s2254_s0 }
   0x2   :  { %2275 = sst [smem:[#allocation23_spill]] %s2258_s4 }
   0x3   :  { %2276 = sst [smem:[#allocation24_spill]] %s2259_s5 }
   0x4   :  { %13 = vsyncpa [#allocation4], 0 }
   0x5   :  { %15 = vsyncpa [#allocation4 + $0x1], 0 }
   0x6   :  { %16 = vsyncpa [#allocation7], 0 }
   0x7   :  { %17 = vsyncpa [#allocation10], 0 }
   0x8   :  { %19 = vsyncpa [#allocation10 + $0x1], 0 }
   0x9   :  { %20 = vsyncpa [#allocation5], 0 }
   0xa   :  { %22 = vsyncpa [#allocation5 + $0x1], 0  ;;  %s1903_s27 = smov 0   ;;  %s1905_s28 = smov 0  }
   0xb   :  { %s1907_s29 = smov 0   ;;  %s1909_s30 = smov 0  }
   0xc   :  { %s1911_s9 = smov 0   ;;  %s1913_s10 = smov 0  }
   0xd LB: > { %2277 = sst [smem:[#allocation16_spill]] %s1824_s27  ;;  %s1301_s11 = sadd.s32 4294967295, %s1844_s10   ;;  %s1844_s10 = sphi %s1913_s10, %s28_s10   ;;  %s1840_s9 = sphi %s1911_s9, %s2309_s9   ;;  %s1836_s30 = sphi %s1909_s30, %s2308_s30   ;;  %s1832_s29 = sphi %s1907_s29, %s2304_s29   ;;  %s1828_s28 = sphi %s1905_s28, %s2307_s28   ;;  %s1824_s27 = sphi %s1903_s27, %s2306_s27  }
   0xe   : > { %2278 = sst [smem:[#allocation17_spill]] %s1832_s29  ;;  %s1302_s12 = sadd.s32 4294967294, %s1844_s10  }
   0xf   : > { %2279 = sst [smem:[#allocation18_spill]] %s1844_s10  ;;  %p62_p0 = scmp.ne.s32.totalorder %s1828_s28, %s1824_s27 }
  0x10   : > { %p1937_p1 = scmp.eq.s32.totalorder %s1301_s11, 0  ;;  %p1941_p2 = scmp.eq.s32.totalorder %s1301_s11, 1 }
  0x11   : > { %p254_p3 = scmp.eq.s32.totalorder %s1302_s12, 1  ;;  %p1303_p5 = scmp.ge.s32.totalorder %s1844_s10, 1 }
  0x12   : > { %s2280_s13 = scalar_select %p1937_p1, 1, 0 }
  0x13   : > { %p1947_p4 = por %p1937_p1, %p62_p0  ;;  %p1952_p6 = por %p254_p3, %p62_p0 }
  0x14   : > { %p261_p7 = scmp.lt.s32.totalorder %s1844_s10, 3  ;;  %s1846_s18 = smov [#allocation6]  }
  0x15   : > { %s2282_s15 = scalar_select %p1947_p4, 1, 0 }
  0x16   : > { %s2283_s16 = scalar_select %p1952_p6, 1, 0 }
  0x17   : > { %p1957_p8 = pnand %p1303_p5, %p261_p7  ;;  %s276_s19 = sshll.u32 %s1846_s18, 4  ;;  %s277_s19 = int_to_ptr.vmem [resolvable:$true] %s276_s19 }
  0x18   : > { %2284 = sst [smem:[#allocation19_spill]] %s2283_s16  ;;  %s1847_s21 = smov [#allocation8]  }
  0x19   : > { %p1537_p9 = pneg %p1957_p8  ;;  %s289_s22 = sshll.u32 %s1847_s21, 4  ;;  %s290_s22 = int_to_ptr.vmem [resolvable:$true] %s289_s22 }
  0x1a   : > { %s1659_s23 = scalar_lea.vmem %s277_s19, 1024  ;;  %p1667_p5 = scmp.lt.s32.totalorder %s277_s19, %s277_s19 }
  0x1b   : > { %p1966_p11 = pnand %p1537_p9, %p1937_p1  ;;  %p1660_p13 = scmp.ne.s32.totalorder %s277_s19, %s1659_s23 }
  0x1c   : > { %p1668_p7 = scmp.lt.s32.totalorder %s1659_s23, %s1659_s23 }
  0x1d   : > { %p1650_p12 = pneg %p1966_p11 }
  0x1e   : > { %p1669_p10 = por %p1668_p7, %p1667_p5 }
  0x1f   : > { %p1662_p0 = pnand %p1660_p13, %p1650_p12 }
  0x21   : > { %p1663_p3 = pneg %p1662_p0 }
  0x23   : > { %p1670_p9 = pnand %p1669_p10, %p1663_p3 }
  0x25   : > { %1673 = shalt.err (!%p1670_p9)
}
  0x26   : > { %s1848_s24 = smov 64   ;;  %s1849_s25 = smov 4  }
  0x27   : > { %s2287_s4 = sld [smem:[#allocation23_spill]]  ;;  %s1685_s12 = scalar_lea.vmem %s290_s22, 1024 }
  0x28   : > { %p1686_p6 = scmp.ne.s32.totalorder %s290_s22, %s1685_s12  ;;  %p1693_p1 = scmp.lt.s32.totalorder %s290_s22, %s290_s22 }
  0x29   : > { %p1694_p4 = scmp.lt.s32.totalorder %s1685_s12, %s1685_s12 }
  0x2a   : > { %p1688_p13 = pnand %p1686_p6, %p1650_p12 }
  0x2b   : > { %p1695_p5 = por %p1694_p4, %p1693_p1 }
  0x2c   : > { %p1689_p0 = pneg %p1688_p13 }
  0x2d   : > { %1540 = dma.hbm_to_vmem [thread:$0]  (!%p1966_p11), %s2287_s4, 1024, %s277_s19, [#allocation7], %s1848_s24, %s1848_s24, %s1849_s25  }
  0x2e   : > { %p1696_p10 = pnand %p1695_p5, %p1689_p0 }
  0x30   : > { %1699 = shalt.err (!%p1696_p10)
}
  0x31   : > { %s2288_s5 = sld [smem:[#allocation24_spill]]  ;;  %s40_s19 = sadd.s32 1, %s1840_s9 }
  0x32   : > { %s49_s23 = sadd.s32 1, %s1832_s29  ;;  %p42_p1 = scmp.ge.s32.totalorder %s40_s19, 2 }
  0x33   : > { %p56_p4 = scmp.ne.s32.totalorder %s1832_s29, %s1828_s28  ;;  %p57_p6 = scmp.eq.s32.totalorder %s1844_s10, 0 }
  0x34   : > { %p1557_p12 = scmp.lt.s32.totalorder %s1844_s10, 2  ;;  %s2311_s19 = smov (%p42_p1, %s40_s19), 0 }
  0x35   : > { %2289 = sst [smem:[#allocation20_spill]] %s2311_s19  ;;  %p58_p3 = por %p57_p6, %p56_p4 }
  0x36   : > { %p1998_p7 = por %p1941_p2, %p56_p4  ;;  %s44_s26 = ssub.s32 %s1840_s9, %s2311_s19 }
  0x37   : > { %1543 = dma.hbm_to_vmem [thread:$0]  (!%p1966_p11), %s2288_s5, 1024, %s290_s22, [#allocation7], %s1848_s24, %s1848_s24, %s1849_s25  }
  0x38   : > { %s2005_s11 = sand.u32 1, %s1832_s29   ;;  %p47_p11 = scmp.eq.s32.totalorder %s44_s26, 0 }
  0x39   : > { %s2266_s22 = sshll.u32 %s2005_s11, 4  ;;  %s2267_s24 = sshll.u32 %s1840_s9, 8 }
  0x3a   : > { %s2010_s25 = scalar_select %p47_p11, %s1832_s29, %s49_s23  }
  0x3b   : > { %s2292_s0 = sld [smem:[#allocation22_spill]]  ;;  %s310_s21 = scalar_lea.vmem [#allocation3], %s2266_s22 }
  0x3c   : > { %2291 = sst [smem:[#allocation21_spill]] %s2010_s25  ;;  %s318_s4 = sshll.u32 %s310_s21, 4  ;;  %s319_s4 = int_to_ptr.vmem [resolvable:$true] %s318_s4 }
  0x3d   : > { %p2021_p2 = pnand %p1557_p12, %p58_p3  ;;  %s307_s26 = scalar_lea.sflag [#allocation4], %s2005_s11 }
  0x3e   : > { %s1713_s23 = scalar_lea.vmem %s319_s4, 256  ;;  %s1850_s12 = smov [#allocation3]  }
  0x3f   : > { %p1702_p9 = pneg %p2021_p2  ;;  %p1714_p13 = scmp.ne.s32.totalorder %s319_s4, %s1713_s23 }
  0x40   : > { %s1718_s18 = sshll.u32 %s1850_s12, 4  ;;  %s1719_s18 = int_to_ptr.vmem [resolvable:$false] %s1718_s18 }
  0x41   : > { %s317_s14 = scalar_lea.hbm %s2292_s0, %s2267_s24  ;;  %p1716_p0 = pnand %p1714_p13, %p1702_p9 }
  0x42   : > { %s1720_s21 = scalar_lea.vmem %s1719_s18, 512  ;;  %p1721_p10 = scmp.lt.s32.totalorder %s319_s4, %s1719_s18 }
  0x43   : > { %p1717_p5 = pneg %p1716_p0  ;;  %p1722_p1 = scmp.lt.s32.totalorder %s1720_s21, %s1713_s23 }
  0x45   : > { %p1723_p4 = por %p1722_p1, %p1721_p10 }
  0x47   : > { %p1724_p6 = pnand %p1723_p4, %p1717_p5 }
  0x49   : > { %1727 = shalt.err (!%p1724_p6)
}
  0x4a   : > { %s1851_s22 = smov 128   ;;  %s1852_s24 = smov 8  }
  0x4b   : > { %1547 = dma.hbm_to_vmem [thread:$0]  (!%p2021_p2), %s317_s14, 256, %s319_s4, %s307_s26, %s1851_s22, %s1851_s22, %s1852_s24  }
  0x4c   : > { %s2294_s0 = sshll.u32 %s1840_s9, 8  ;;  %s2295_s29 = sshll.u32 %s2005_s11, 4 }
  0x4d   : > { %s356_s12 = scalar_lea.hbm %s2261_s7, %s2294_s0  ;;  %s350_s18 = scalar_lea.vmem [#allocation9], %s2295_s29 }
  0x4e   : > { %s357_s23 = sshll.u32 %s350_s18, 4  ;;  %s347_s21 = scalar_lea.sflag [#allocation10], %s2005_s11  ;;  %s358_s23 = int_to_ptr.vmem [resolvable:$true] %s357_s23 }
  0x4f   : > { %s1741_s10 = scalar_lea.vmem %s358_s23, 256  ;;  %s1853_s16 = smov [#allocation9]  }
  0x50   : > { %p1742_p12 = scmp.ne.s32.totalorder %s358_s23, %s1741_s10  ;;  %s1746_s27 = sshll.u32 %s1853_s16, 4  ;;  %s1747_s27 = int_to_ptr.vmem [resolvable:$false] %s1746_s27 }
  0x51   : > { %s1748_s4 = scalar_lea.vmem %s1747_s27, 512  ;;  %p1749_p13 = scmp.lt.s32.totalorder %s358_s23, %s1747_s27 }
  0x52   : > { %p1744_p3 = pnand %p1742_p12, %p1702_p9  ;;  %p1750_p0 = scmp.lt.s32.totalorder %s1748_s4, %s1741_s10 }
  0x54   : > { %p1745_p11 = pneg %p1744_p3  ;;  %p1751_p5 = por %p1750_p0, %p1749_p13 }
  0x56   : > { %p1752_p10 = pnand %p1751_p5, %p1745_p11 }
  0x58   : > { %1755 = shalt.err (!%p1752_p10)
}
  0x59   : > { %1550 = dma.hbm_to_vmem [thread:$0]  (!%p2021_p2), %s356_s12, 256, %s358_s23, %s347_s21, %s1851_s22, %s1851_s22, %s1852_s24  }
  0x5a   : > { %369 = sbr.rel (%p1957_p8) target bundleno = 595 (0x253), region = 52  ;;  %s2049_s0 = sand.u32 (!%p1957_p8), 1, %s1828_s28  }
  0x5b   : > { %s1314_s29 = sshll.u32 (!%p1957_p8), %s2049_s0, 4  ;;  %s372_s16 = scalar_lea.sflag (!%p1957_p8), [#allocation4], %s2049_s0 }
  0x5c   : > { %s2053_s19 = scalar_lea.vmem (!%p1957_p8), [#allocation3], %s1314_s29  ;;  %p2296_p9 = scmp.ne.s32.totalorder (!%p1957_p8), %s2282_s15, 0 }
  0x5f   : > { %1807 = dma.done.wait (%p2296_p9), %s372_s16, 256  }
  0x60   : > { %1809 = vsyncadd (%p2296_p9), %s372_s16, 4294967040  ;;  %p2297_p2 = scmp.ne.s32.totalorder %s2280_s13, 0 }
  0x62   : > { %1811 = dma.done.wait (%p2297_p2), [#allocation7], 2048  }
  0x63   : > { %1813 = vsyncadd (%p2297_p2), [#allocation7], 4294965248  ;;  %s389_s5 = scalar_lea.sflag [#allocation10], %s2049_s0  ;;  %s2064_s27 = scalar_lea.vmem [#allocation9], %s1314_s29 }
  0x64   : > { %1815 = dma.done.wait (%p2296_p9), %s389_s5, 256  }
  0x65   : > { %1817 = vsyncadd (%p2296_p9), %s389_s5, 4294967040  ;;  %s1319_s10 = sshll.u32 %s1836_s30, 3  ;;  %v1854_v0 = vmov 0   ;;  %v1620_v1 = vld [vmem:[%s2255_s1 + $0x38] sm:$0xff]   ;;  %v1621_v2 = vld [vmem:[%s2255_s1 + $0x30] sm:$0xff]   ;;  %s1318_s14 = sshll.u32 %s2049_s0, 5 }
  0x66   : > { %1618 = vset.pattern.permute.xlu0 %v1854_v0  ;;  %1619 = vset.pattern.permute.xlu1 %v1854_v0  ;;  %p442_p8 = scmp.lt.s32.totalorder %s1319_s10, 15  ;;  %v1622_v3 = vld [vmem:[%s2255_s1 + $0x28] sm:$0xff]   ;;  %v1623_v4 = vld [vmem:[%s2255_s1 + $0x20] sm:$0xff]   ;;  %v1624_v9 = vld [vmem:[%s2255_s1 + $0x18] sm:$0xff]   ;;  %s2184_s26 = scalar_lea.vmem [#allocation11], %s1318_s14 }
  0x67   : > { %1435 = vmatprep.subr.bf16.mxu0 %v1620_v1  ;;  %v470_v5 = vld [vmem:[%s2053_s19] sm:$0xff]  ;;  %v1628_v12 = vld [vmem:[#allocation8 + $0x38] sm:$0xff]   ;;  %v1632_v17 = vld [vmem:[#allocation8 + $0x28] sm:$0xff]   ;;  %s1855_s29 = smov [#allocation11]  }
  0x68   : > { %s2313_s10 = smov (!%p442_p8, %s1319_s10), 15  ;;  %1436 = vmatpush3.bf16.msra.mxu0 %v1620_v1  ;;  %v472_v7 = vunpack.c.l.s8.bf16 %v470_v5  ;;  %v1625_v14 = vld [vmem:[%s2255_s1 + $0x10] sm:$0xff]   ;;  %1459 = vmatprep.subr.bf16.mxu1 %v1628_v12  ;;  %v1626_v18 = vld [vmem:[%s2255_s1 + $0x8] sm:$0xff]   ;;  %v1634_v21 = vld [vmem:[#allocation8 + $0x20] sm:$0xff]   ;;  %v473_v27 = vunpack.c.h.s8.bf16 %v470_v5  ;;  %s1760_s16 = sshll.u32 %s1855_s29, 4  ;;  %s1761_s16 = int_to_ptr.vmem [resolvable:$false] %s1760_s16 }
  0x69   : > { %s1322_s15 = sshll.u32 %s2313_s10, 3  ;;  %1437 = vmatprep.subr.bf16.mxu0 %v1621_v2  ;;  %v1630_v15 = vld [vmem:[#allocation8 + $0x30] sm:$0xff]   ;;  %1460 = vmatpush3.bf16.msra.mxu1 %v1628_v12  ;;  %v1627_v22 = vld [vmem:[%s2255_s1] sm:$0xff]   ;;  %v1636_v23 = vld [vmem:[#allocation8 + $0x18] sm:$0xff]   ;;  %s1762_s5 = scalar_lea.vmem %s1761_s16, 1024 }
  0x6a   : > { %s2088_s12 = scalar_lea.vmem %s2257_s3, %s1322_s15  ;;  %1451 = vmatprep.mubr.bf16.mxu0 %v472_v7  ;;  %1461 = vmatprep.subr.bf16.mxu1 %v1630_v15  ;;  %v471_v24 = vld [vmem:[%s2053_s19 + $0x8] sm:$0xff]  ;;  %v1638_v26 = vld [vmem:[#allocation8 + $0x10] sm:$0xff]   ;;  %v2126_v32 = vld [vmem:[#allocation6 + $0x20] sm:$0xff]   ;;  %s1320_s19 = sshll.u32 %s2313_s10, 2 }
  0x6b   : > { %v645_v6 = vld [vmem:[%s2088_s12] sm:$0xff]  ;;  %v647_v8 = vld [vmem:[%s2088_s12 + $0x10] sm:$0xff]  ;;  %v646_v10 = vld [vmem:[%s2088_s12 + $0x8] sm:$0xff]  ;;  %v474_v28 = vunpack.c.l.s8.bf16 %v471_v24  ;;  %v475_v31 = vunpack.c.h.s8.bf16 %v471_v24  ;;  %s2147_s24 = scalar_lea.vmem %s2256_s2, %s1320_s19 }
  0x6c   : > { %1438 = vmatpush3.bf16.msra.mxu0 %v1621_v2  ;;  %655 = vperm.xlu0 %1618, %v645_v6   ;;  %v648_v11 = vld [vmem:[%s2088_s12 + $0x18] sm:$0xff]  ;;  %v649_v13 = vld [vmem:[%s2088_s12 + $0x20] sm:$0xff]  ;;  %v650_v16 = vld [vmem:[%s2088_s12 + $0x28] sm:$0xff] }
  0x6d   : > { %1439 = vmatprep.subr.bf16.mxu0 %v1622_v3  ;;  %665 = vperm.xlu1 %1619, %v647_v8   ;;  %v651_v19 = vld [vmem:[%s2088_s12 + $0x30] sm:$0xff]  ;;  %v652_v20 = vld [vmem:[%s2088_s12 + $0x38] sm:$0xff]  ;;  %v2122_v30 = vld [vmem:[#allocation6 + $0x28] sm:$0xff]   ;;  %s1375_s12 = sshll.u32 %s1836_s30, 9  ;;  %s1137_s30 = scalar_lea.sflag [#allocation5], %s2049_s0 }
  0x6e   : > { %1462 = vmatpush3.bf16.msra.mxu1 %v1630_v15  ;;  %v2115_v25 = vld [vmem:[#allocation6 + $0x38] sm:$0xff]   ;;  %v2118_v29 = vld [vmem:[#allocation6 + $0x30] sm:$0xff]   ;;  %v1640_v35 = vld [vmem:[#allocation8 + $0x8] sm:$0xff]   ;;  %s2204_s21 = scalar_lea.hbm %s2262_s8, %s1375_s12 }
  0x6f   : > { %1463 = vmatprep.subr.bf16.mxu1 %v1632_v17  ;;  %v2130_v33 = vld [vmem:[#allocation6 + $0x18] sm:$0xff]   ;;  %v2135_v34 = vld [vmem:[#allocation6 + $0x10] sm:$0xff]   ;;  %v2139_v36 = vld [vmem:[#allocation6 + $0x8] sm:$0xff]  }
  0x70   : > { %1440 = vmatpush3.bf16.msra.mxu0 %v1622_v3  ;;  %660 = vperm.xlu0 %1618, %v646_v10   ;;  %v1642_v37 = vld [vmem:[#allocation8] sm:$0xff]   ;;  %v1645_v40 = vld [vmem:[%s2147_s24 + $0x8] sm:$0xff]   ;;  %v1646_v5 = vld [vmem:[%s2147_s24 + $0x10] sm:$0xff]  }
  0x71   : > { %1441 = vmatprep.subr.bf16.mxu0 %v1623_v4  ;;  %670 = vperm.xlu1 %1619, %v648_v11   ;;  %v1643_v38 = vld [vmem:[#allocation6] sm:$0xff]   ;;  %v1647_v7 = vld [vmem:[%s2147_s24 + $0x18] sm:$0xff]  }
  0x72   : > { %1464 = vmatpush3.bf16.msra.mxu1 %v1632_v17  ;;  %v1644_v39 = vld [vmem:[%s2147_s24] sm:$0xff]  }
  0x73   : > { %1465 = vmatprep.subr.bf16.mxu1 %v1634_v21  ;;  %v1018_v8 = vld [vmem:[%s2064_s27] sm:$0xff] }
  0x74   : > { %1442 = vmatpush3.bf16.msra.mxu0 %v1623_v4  ;;  %675 = vperm.xlu0 %1618, %v649_v13   ;;  %vm1020_vm0 = vnez %v1018_v8 }
  0x75   : > { %1443 = vmatprep.subr.bf16.mxu0 %v1624_v9  ;;  %680 = vperm.xlu1 %1619, %v650_v16  }
  0x76   : > { %1466 = vmatpush3.bf16.msra.mxu1 %v1634_v21 }
  0x77   : > { %1467 = vmatprep.subr.bf16.mxu1 %v1636_v23 }
  0x78   : > { %1444 = vmatpush3.bf16.msra.mxu0 %v1624_v9  ;;  %685 = vperm.xlu0 %1618, %v651_v19   ;;  %v1030_v9 = vsel %vm1020_vm0, 16843009, %v1854_v0 }
  0x79   : > { %1445 = vmatprep.subr.bf16.mxu0 %v1625_v14  ;;  %690 = vperm.xlu1 %1619, %v652_v20   ;;  %v1034_v10 = vunpack.c.2.s8 %v1030_v9  ;;  %v1035_v11 = vunpack.c.3.s8 %v1030_v9  ;;  %v1032_v12 = vunpack.c.0.s8 %v1030_v9  ;;  %v1033_v13 = vunpack.c.1.s8 %v1030_v9 }
  0x7a   : > { %1468 = vmatpush3.bf16.msra.mxu1 %v1636_v23 }
  0x7b   : > { %1469 = vmatprep.subr.bf16.mxu1 %v1638_v26  ;;  %v1044_v15 = vpack.c.b16 %v1034_v10, %v1034_v10  ;;  %v1046_v16 = vpack.c.b16 %v1035_v11, %v1035_v11  ;;  %v1040_v17 = vpack.c.b16 %v1032_v12, %v1032_v12 }
  0x7c   : > { %1446 = vmatpush3.bf16.msra.mxu0 %v1625_v14 }
  0x7d   : > { %1447 = vmatprep.subr.bf16.mxu0 %v1626_v18  ;;  %v1045_v19 = vpack.c.b8 %v1044_v15, %v1044_v15  ;;  %v1047_v21 = vpack.c.b8 %v1046_v16, %v1046_v16 }
  0x7e   : > { %1470 = vmatpush3.bf16.msra.mxu1 %v1638_v26 }
  0x7f   : > { %1471 = vmatprep.subr.bf16.mxu1 %v1640_v35  ;;  %vm1058_vm1 = vnez %v1045_v19  ;;  %vm1059_vm2 = vnez %v1047_v21 }
  0x80   : > { %1448 = vmatpush3.bf16.msra.mxu0 %v1626_v18  ;;  %v1042_v18 = vpack.c.b16 %v1033_v13, %v1033_v13 }
  0x81   : > { %1449 = vmatprep.subr.bf16.mxu0 %v1627_v22 }
  0x82   : > { %1472 = vmatpush3.bf16.msra.mxu1 %v1640_v35  ;;  %v1043_v23 = vpack.c.b8 %v1042_v18, %v1042_v18 }
  0x83   : > { %1473 = vmatprep.subr.bf16.mxu1 %v1642_v37 }
  0x84   : > { %1450 = vmatpush3.bf16.msra.mxu0 %v1627_v22  ;;  %v1041_v22 = vpack.c.b8 %v1040_v17, %v1040_v17  ;;  %vm1057_vm4 = vnez %v1043_v23 }
  0x85   : > { %1483 = vmatprep.subr.bf16.mxu0 %v2115_v25 }
  0x86   : > { %1474 = vmatpush3.bf16.msra.mxu1 %v1642_v37  ;;  %vm1056_vm3 = vnez %v1041_v22 }
  0x87   : > { %1452 = vmatmul.mubr.bf16.vlgmr.msra.gmra.mxu0 %v473_v27  ;;  %1507 = vmatprep.subr.bf16.mxu1 %v2115_v25 }
  0x88   : > { %1455 = vmatprep.mubr.bf16.mxu0 %v474_v28  ;;  %1484 = vmatpush3.bf16.msra.mxu0 %v2115_v25 }
  0x89   : > { %1485 = vmatprep.subr.bf16.mxu0 %v2118_v29 }
  0x8c   : > { %1486 = vmatpush3.bf16.msra.mxu0 %v2118_v29 }
  0x8d   : > { %1487 = vmatprep.subr.bf16.mxu0 %v2122_v30 }
  0x8f   : > { %1456 = vmatmul.mubr.bf16.gmra.mxu0 %v475_v31 }
  0x90   : > { %1488 = vmatpush3.bf16.msra.mxu0 %v2122_v30  ;;  %1499 = vmatprep.mubr.bf16.mxu0 %v1644_v39  ;;  %v1065_v39 = vsel %vm1057_vm4, 16843009, %v1854_v0 }
  0x91   : > { %1489 = vmatprep.subr.bf16.mxu0 %v2126_v32 }
  0x94   : > { %1490 = vmatpush3.bf16.msra.mxu0 %v2126_v32 }
  0x95   : > { %1491 = vmatprep.subr.bf16.mxu0 %v2130_v33 }
  0x98   : > { %1492 = vmatpush3.bf16.msra.mxu0 %v2130_v33 }
  0x99   : > { %1493 = vmatprep.subr.bf16.mxu0 %v2135_v34 }
  0x9c   : > { %1494 = vmatpush3.bf16.msra.mxu0 %v2135_v34 }
  0x9d   : > { %1495 = vmatprep.subr.bf16.mxu0 %v2139_v36 }
  0xa0   : > { %1496 = vmatpush3.bf16.msra.mxu0 %v2139_v36 }
  0xa1   : > { %1497 = vmatprep.subr.bf16.mxu0 %v1643_v38 }
  0xa4   : > { %1498 = vmatpush3.bf16.msra.mxu0 %v1643_v38 }
  0xa7   : > { %1500 = vmatmul.mubr.bf16.vlgmr.msra.gmra.mxu0 %v1645_v40 }
  0xe7   : > { %v656_v42 = vpop.permute.xlu0 %655 }
  0xe8   : > { %v666_v41 = vpop.permute.xlu1 %665 }
  0xeb   : > { %v661_v46 = vpop.permute.xlu0 %660 }
  0xec   : > { %v671_v44 = vpop.permute.xlu1 %670 }
  0xef   : > { %v676_v55 = vpop.permute.xlu0 %675 }
  0xf0   : > { %v681_v50 = vpop.permute.xlu1 %680 }
  0xf3   : > { %v686_v63 = vpop.permute.xlu0 %685 }
  0xf4   : > { %v691_v60 = vpop.permute.xlu1 %690 }
 0x147   : > { %v1453_v43 = vpop.f32.mrf.mxu0 }
 0x148   : > { %v695_v53 = vmul.f32 %v1453_v43, %v666_v41 }
 0x149   : > { %v587_v45 = vpop.f32.mrf.mxu0 }
 0x14a   : > { %v693_v51 = vmul.f32 %v656_v42, %v587_v45 }
 0x14b   : > { %v1454_v47 = vpop.f32.mrf.mxu0 }
 0x14c   : > { %v696_v48 = vmul.f32 %v1454_v47, %v671_v44  ;;  %v1073_v47 = vunpack.c.0.s8 %v1065_v39 }
 0x14d   : > { %v590_v49 = vpop.f32.mrf.mxu0 }
 0x14e   : > { %v694_v52 = vmul.f32 %v661_v46, %v590_v49  ;;  %v702_v57 = vpack.c.bf16 %v696_v48, %v695_v53  ;;  %vm1081_vm8 = vcmp.ne.s32.totalorder %v1073_v47, 0 }
 0x14f   : > { %v1457_v54 = vpop.f32.mrf.mxu0 }
 0x150   : > { %v701_v56 = vpack.c.bf16 %v694_v52, %v693_v51  ;;  %v699_v3 = vmul.f32 %v1457_v54, %v686_v63  ;;  %v1019_v54 = vld [vmem:[%s2064_s27 + $0x8] sm:$0xff]  ;;  %s1150_s27 = sshll.u32 %s2184_s26, 4  ;;  %s2199_s27 = int_to_ptr.vmem [resolvable:$true] %s1150_s27 }
 0x151   : > { %v603_v58 = vpop.f32.mrf.mxu0  ;;  %vm1021_vm9 = vnez %v1019_v54  ;;  %s1756_s4 = scalar_lea.vmem %s2199_s27, 512  ;;  %p1763_p12 = scmp.lt.s32.totalorder %s2199_s27, %s1761_s16 }
 0x152   : > { %1475 = vmatprep.mubr.bf16.mxu1 %v701_v56  ;;  %v697_v1 = vmul.f32 %v676_v55, %v603_v58  ;;  %p1757_p1 = scmp.ne.s32.totalorder %s2199_s27, %s1756_s4  ;;  %p1764_p3 = scmp.lt.s32.totalorder %s1762_s5, %s1756_s4 }
 0x153   : > { %v1458_v59 = vpop.f32.mrf.mxu0  ;;  %1476 = vmatmul.mubr.bf16.vlgmr.msra.gmra.mxu1 %v702_v57 }
 0x154   : > { %1515 = vmatpush3.bf16.msra.mxu1 %v2115_v25  ;;  %v700_v61 = vmul.f32 %v1458_v59, %v691_v60  ;;  %v2172_v25 = vld [vmem:[%s2260_s6] ss:$0 sm:$0xff]  ;;  %p1758_p4 = pnand %p1757_p1, %p1998_p7  ;;  %p1765_p11 = por %p1764_p3, %p1763_p12 }
 0x155   : > { %v606_v62 = vpop.f32.mrf.mxu0  ;;  %1508 = vmatprep.subr.bf16.mxu1 %v2118_v29 }
 0x156   : > { %v698_v2 = vmul.f32 %v681_v50, %v606_v62  ;;  %v704_v6 = vpack.c.bf16 %v700_v61, %v699_v3  ;;  %v1031_v62 = vsel %vm1021_vm9, 16843009, %v1854_v0  ;;  %p1759_p6 = pneg %p1758_p4 }
 0x157   : > { %v1036_v3 = vunpack.c.0.s8 %v1031_v62 }
 0x158   : > { %v703_v4 = vpack.c.bf16 %v698_v2, %v697_v1  ;;  %1516 = vmatpush3.bf16.msra.mxu1 %v2118_v29  ;;  %v1038_v1 = vunpack.c.2.s8 %v1031_v62  ;;  %v1039_v2 = vunpack.c.3.s8 %v1031_v62  ;;  %p1766_p13 = pnand %p1765_p11, %p1759_p6 }
 0x159   : > { %1509 = vmatprep.subr.bf16.mxu1 %v2122_v30  ;;  %v1048_v8 = vpack.c.b16 %v1036_v3, %v1036_v3 }
 0x15a   : > { %1479 = vmatprep.mubr.bf16.mxu1 %v703_v4 }
 0x15b   : > { %1480 = vmatmul.mubr.bf16.gmra.mxu1 %v704_v6  ;;  %v1052_v6 = vpack.c.b16 %v1038_v1, %v1038_v1  ;;  %v1049_v13 = vpack.c.b8 %v1048_v8, %v1048_v8 }
 0x15c   : > { %1517 = vmatpush3.bf16.msra.mxu1 %v2122_v30  ;;  %1503 = vmatprep.mubr.bf16.mxu1 %v1646_v5  ;;  %v1066_v30 = vsel %vm1058_vm1, 16843009, %v1854_v0  ;;  %v1037_v5 = vunpack.c.1.s8 %v1031_v62 }
 0x15d   : > { %1510 = vmatprep.subr.bf16.mxu1 %v2126_v32  ;;  %v1074_v40 = vunpack.c.0.s8 %v1066_v30  ;;  %v1053_v11 = vpack.c.b8 %v1052_v6, %v1052_v6  ;;  %vm1060_vm12 = vnez %v1049_v13 }
 0x15e   : > { %v1050_v10 = vpack.c.b16 %v1037_v5, %v1037_v5  ;;  %v1068_v23 = vsel %vm1060_vm12, 16843009, %v1854_v0 }
 0x15f   : > { %vm1082_vm5 = vcmp.ne.s32.totalorder %v1074_v40, 0  ;;  %vm1062_vm10 = vnez %v1053_v11 }
 0x160   : > { %1518 = vmatpush3.bf16.msra.mxu1 %v2126_v32  ;;  %v1067_v32 = vsel %vm1059_vm2, 16843009, %v1854_v0  ;;  %v1051_v15 = vpack.c.b8 %v1050_v10, %v1050_v10 }
 0x161   : > { %1511 = vmatprep.subr.bf16.mxu1 %v2130_v33  ;;  %v1075_v41 = vunpack.c.0.s8 %v1067_v32 }
 0x162   : > { %vm1061_vm13 = vnez %v1051_v15 }
 0x163   : > { %vm1083_vm6 = vcmp.ne.s32.totalorder %v1075_v41, 0 }
 0x164   : > { %1519 = vmatpush3.bf16.msra.mxu1 %v2130_v33  ;;  %v1064_v33 = vsel %vm1056_vm3, 16843009, %v1854_v0 }
 0x165   : > { %1512 = vmatprep.subr.bf16.mxu1 %v2135_v34  ;;  %v1072_v46 = vunpack.c.0.s8 %v1064_v33 }
 0x167   : > { %v1501_v14 = vpop.f32.mrf.mxu0  ;;  %vm1080_vm7 = vcmp.ne.s32.totalorder %v1072_v46, 0 }
 0x168   : > { %1520 = vmatpush3.bf16.msra.mxu1 %v2135_v34 }
 0x169   : > { %1513 = vmatprep.subr.bf16.mxu1 %v2139_v36  ;;  %v964_v20 = vpop.f32.mrf.mxu0 }
 0x16b   : > { %v1502_v26 = vpop.f32.mrf.mxu0 }
 0x16c   : > { %1521 = vmatpush3.bf16.msra.mxu1 %v2139_v36 }
 0x16d   : > { %1514 = vmatprep.subr.bf16.mxu1 %v1643_v38  ;;  %v967_v35 = vpop.f32.mrf.mxu0 }
 0x170   : > { %1522 = vmatpush3.bf16.msra.mxu1 %v1643_v38 }
 0x173   : > { %1504 = vmatmul.mubr.bf16.vlgmr.msra.gmra.mxu1 %v1647_v7  ;;  %v1054_v7 = vpack.c.b16 %v1039_v2, %v1039_v2 }
 0x175   : > { %v1055_v12 = vpack.c.b8 %v1054_v7, %v1054_v7 }
 0x177   : > { %vm1063_vm11 = vnez %v1055_v12 }
 0x178   : > { %v1071_v22 = vsel %vm1063_vm11, 16843009, %v1854_v0 }
 0x213   : > { %v1477_v24 = vpop.f32.mrf.mxu1 }
 0x214   : > { %v973_v27 = vadd.f32 %v1501_v14, %v1477_v24 }
 0x215   : > { %v827_v28 = vpop.f32.mrf.mxu1 }
 0x216   : > { %v1004_v29 = vadd.f32 %v2172_v25, %v973_v27  ;;  %v965_v31 = vadd.f32 %v964_v20, %v827_v28  ;;  %v1070_v20 = vsel %vm1062_vm10, 16843009, %v1854_v0 }
 0x217   : > { %v1478_v34 = vpop.f32.mrf.mxu1  ;;  %v1078_v30 = vunpack.c.0.s8 %v1070_v20 }
 0x218   : > { %v1012_v36 = vmax.f32 %v1004_v29, 0.0  ;;  %v1002_v37 = vadd.f32 %v2172_v25, %v965_v31  ;;  %v976_v38 = vadd.f32 %v1502_v26, %v1478_v34  ;;  %v1069_v29 = vsel %vm1061_vm13, 16843009, %v1854_v0 }
 0x219   : > { %v830_v42 = vpop.f32.mrf.mxu1  ;;  %v1079_v31 = vunpack.c.0.s8 %v1071_v22  ;;  %vm1086_vm14 = vcmp.ne.s32.totalorder %v1078_v30, 0 }
 0x21a   : > { %v1010_v43 = vmax.f32 %v1002_v37, 0.0  ;;  %v1005_v44 = vadd.f32 %v2172_v25, %v976_v38  ;;  %v968_v45 = vadd.f32 %v967_v35, %v830_v42  ;;  %v1024_v48 = vmul.f32 2.0, %v1012_v36 }
 0x21b   : > { %v1481_v63 = vpop.f32.mrf.mxu1  ;;  %v1076_v36 = vunpack.c.0.s8 %v1068_v23  ;;  %v1077_v37 = vunpack.c.0.s8 %v1069_v29  ;;  %vm1087_vm15 = vcmp.ne.s32.totalorder %v1079_v31, 0 }
 0x21c   : > { %v1013_v49 = vmax.f32 %v1005_v44, 0.0  ;;  %v1003_v50 = vadd.f32 %v2172_v25, %v968_v45  ;;  %v1022_v51 = vmul.f32 2.0, %v1010_v43  ;;  %v1090_v55 = vsel %vm1082_vm5, %v1024_v48, 0.0 }
 0x21d   : > { %v843_v4 = vpop.f32.mrf.mxu1  ;;  %vm1084_vm0 = vcmp.ne.s32.totalorder %v1076_v36, 0  ;;  %vm1085_vm1 = vcmp.ne.s32.totalorder %v1077_v37, 0 }
 0x21e   : > { %v1025_v52 = vmul.f32 2.0, %v1013_v49  ;;  %v1011_v53 = vmax.f32 %v1003_v50, 0.0  ;;  %v1088_v59 = vsel %vm1080_vm7, %v1022_v51, 0.0 }
 0x21f   : > { %v1482_v9 = vpop.f32.mrf.mxu1 }
 0x220   : > { %v1091_v56 = vsel %vm1083_vm6, %v1025_v52, 0.0  ;;  %v1023_v57 = vmul.f32 2.0, %v1011_v53 }
 0x221   : > { %v1384_v58 = vpack.c.bf16 %v1091_v56, %v1090_v55  ;;  %v846_v14 = vpop.f32.mrf.mxu1 }
 0x222   : > { %v1089_v60 = vsel %vm1081_vm8, %v1023_v57, 0.0 }
 0x223   : > { %1396 = vst [vmem:[%s2184_s26 + $0x8] sm:$0xff] %v1384_v58   ;;  %v1379_v61 = vpack.c.bf16 %v1089_v60, %v1088_v59 }
 0x225   : > { %1380 = vst [vmem:[%s2184_s26] sm:$0xff] %v1379_v61  }
 0x233   : > { %v1505_v16 = vpop.f32.mrf.mxu1 }
 0x234   : > { %v989_v17 = vadd.f32 %v1505_v16, %v1481_v63 }
 0x235   : > { %v980_v18 = vpop.f32.mrf.mxu1 }
 0x236   : > { %v1008_v19 = vadd.f32 %v2172_v25, %v989_v17  ;;  %v981_v21 = vadd.f32 %v980_v18, %v843_v4 }
 0x237   : > { %v1506_v24 = vpop.f32.mrf.mxu1 }
 0x238   : > { %v1016_v26 = vmax.f32 %v1008_v19, 0.0  ;;  %v1006_v27 = vadd.f32 %v2172_v25, %v981_v21  ;;  %v992_v28 = vadd.f32 %v1506_v24, %v1482_v9 }
 0x239   : > { %v983_v32 = vpop.f32.mrf.mxu1 }
 0x23a   : > { %v1014_v33 = vmax.f32 %v1006_v27, 0.0  ;;  %v1009_v34 = vadd.f32 %v2172_v25, %v992_v28  ;;  %v984_v35 = vadd.f32 %v983_v32, %v846_v14  ;;  %v1028_v38 = vmul.f32 2.0, %v1016_v26 }
 0x23c   : > { %v1017_v39 = vmax.f32 %v1009_v34, 0.0  ;;  %v1007_v40 = vadd.f32 %v2172_v25, %v984_v35  ;;  %v1026_v41 = vmul.f32 2.0, %v1014_v33  ;;  %v1094_v43 = vsel %vm1086_vm14, %v1028_v38, 0.0 }
 0x23e   : > { %v1029_v0 = vmul.f32 2.0, %v1017_v39  ;;  %v1015_v42 = vmax.f32 %v1007_v40, 0.0  ;;  %v1092_v46 = vsel %vm1084_vm0, %v1026_v41, 0.0 }
 0x240   : > { %v1095_v44 = vsel %vm1087_vm15, %v1029_v0, 0.0  ;;  %v1027_v45 = vmul.f32 2.0, %v1015_v42 }
 0x241   : > { %v1394_v25 = vpack.c.bf16 %v1095_v44, %v1094_v43 }
 0x242   : > { %v1093_v47 = vsel %vm1085_vm1, %v1027_v45, 0.0 }
 0x243   : > { %1398 = vst [vmem:[%s2184_s26 + $0x18] sm:$0xff] %v1394_v25   ;;  %v1389_v48 = vpack.c.bf16 %v1093_v47, %v1092_v46 }
 0x245   : > { %1397 = vst [vmem:[%s2184_s26 + $0x10] sm:$0xff] %v1389_v48  }
 0x246   : > { %1769 = shalt.err (!%p1766_p13)
}
 0x247   : > { %s1770_s13 = scalar_lea.hbm %s2204_s21, 512  ;;  %s1774_s19 = scalar_lea.hbm %s2262_s8, 1024 }
 0x248   : > { %p1771_p0 = scmp.ne.s32.totalorder %s2204_s21, %s1770_s13  ;;  %p1775_p9 = scmp.lt.s32.totalorder %s2204_s21, %s2262_s8 }
 0x249   : > { %p1776_p2 = scmp.lt.s32.totalorder %s1774_s19, %s1770_s13 }
 0x24a   : > { %p1772_p5 = pnand %p1771_p0, %p1998_p7 }
 0x24b   : > { %p1777_p8 = por %p1776_p2, %p1775_p9 }
 0x24c   : > { %p1773_p10 = pneg %p1772_p5 }
 0x24e   : > { %p1778_p1 = pnand %p1777_p8, %p1773_p10 }
 0x250   : > { %1781 = shalt.err (!%p1778_p1)
}
 0x251   : > { %s1856_s24 = smov 64   ;;  %s1857_s10 = smov 4  }
 0x252   : > { %1535 = dma.vmem_to_hbm [thread:$0]  (%p1998_p7), %s2199_s27, 512, %s2204_s21, %s1137_s30, %s1856_s24, %s1856_s24, %s1857_s10  }
 0x253 PF: > { %s2298_s25 = sld [smem:[#allocation16_spill]] }
 0x254   : > { %s2299_s14 = sld [smem:[#allocation19_spill]] }
 0x255   : > { %s2300_s26 = sld [smem:[#allocation18_spill]] }
 0x259   : > { %s1165_s12 = sand.u32 1, %s2298_s25  }
 0x25a   : > { %p2301_p4 = scmp.ne.s32.totalorder %s2299_s14, 0  ;;  %s1166_s18 = scalar_lea.sflag [#allocation5], %s1165_s12 }
 0x25b   : > { %p2302_p6 = scmp.ge.s32.totalorder %s2300_s26, 2 }
 0x25d   : > { %p1552_p12 = pnand %p2302_p6, %p2301_p4 }
 0x25f   : > { %p1553_p3 = pneg %p1552_p12 }
 0x261   : > { %1819 = dma.done.wait (%p1553_p3), %s1166_s18, 512  }
 0x262   : > { %1821 = vsyncadd (%p1553_p3), %s1166_s18, 4294966784  ;;  %s28_s10 = sadd.s32 1, %s2300_s26   ;;  %s2303_s23 = sld [smem:[#allocation17_spill]] }
 0x263   : > { %p25_p11 = scmp.ge.s32.totalorder %s28_s10, 4   ;;  %s2304_s29 = sld [smem:[#allocation21_spill]] }
 0x264   : > { %s2305_s20 = sld [smem:[#allocation20_spill]]  ;;  %s2306_s27 = smov %s1828_s28 }
 0x265   : > { %s2308_s30 = smov %s1840_s9 }
 0x266   :  { %27 = sbr.rel (!%p25_p11) target bundleno = 13 (0xd), region = 133 }
 0x268   : > { %s2307_s28 = smov %s2303_s23 }
 0x26a   : > { %s2309_s9 = smov %s2305_s20 }
 0x26b   :  { %1171 = vsyncpa [#allocation4], 1 }
 0x26c   :  { %1173 = vsyncpa [#allocation4 + $0x1], 1 }
 0x26d   :  { %1174 = vsyncpa [#allocation7], 1 }
 0x26e   :  { %1175 = vsyncpa [#allocation10], 1 }
 0x26f   :  { %1177 = vsyncpa [#allocation10 + $0x1], 1 }
 0x270   :  { %1178 = vsyncpa [#allocation5], 1 }
 0x271   :  { %1180 = vsyncpa [#allocation5 + $0x1], 1 }

</bundles_post_ra>
